<compile_context>
chip_gen: v7x
topology: tpu7x:2x2x1
jax: 0.10.0
libtpu: 0.0.40
codegen_flags: <defaults>
</compile_context>

<pallas_src>
import functools

import jax
import jax.numpy as jnp
from jax.experimental import pallas as pl
from jax.experimental.pallas import tpu as pltpu


def _round_up(x, m):
    return (x + m - 1) // m * m


def _cdiv(a, b):
    return -(-a // b)


def _use_bf16_exp():
    # bf16 EUP exp only helps (and only exists) on v6e / v7x; keep f32 on v5e & older.
    kind = jax.devices()[0].device_kind.lower()
    return ("v6" in kind) or ("v7" in kind)


# --------------------------------------------------------------------------
# Kernel A: pairwise IoU (jaccard) between ground-truth boxes and priors
# --------------------------------------------------------------------------
def _iou_kernel(truths_ref, priors_ref, out_ref):
    # truths_ref: (1, O, 4) point-form GT boxes for one image
    # priors_ref: (4, TP)   point-form prior tile, coords on sublanes, priors on lanes
    # out_ref   : (1, O, TP) IoU tile
    t = truths_ref[0]                                                 # (O, 4)
    tx1, ty1, tx2, ty2 = t[:, 0:1], t[:, 1:2], t[:, 2:3], t[:, 3:4]   # (O, 1)
    px1, py1 = priors_ref[0:1, :], priors_ref[1:2, :]                 # (1, TP)
    px2, py2 = priors_ref[2:3, :], priors_ref[3:4, :]
    iw = jnp.maximum(jnp.minimum(tx2, px2) - jnp.maximum(tx1, px1), 0.0)
    ih = jnp.maximum(jnp.minimum(ty2, py2) - jnp.maximum(ty1, py1), 0.0)
    inter = iw * ih                                                   # (O, TP)
    area_t = (tx2 - tx1) * (ty2 - ty1)                                # (O, 1)
    area_p = (px2 - px1) * (py2 - py1)                                # (1, TP)
    union = jnp.maximum(area_t + area_p - inter, 1e-12)               # NaN guard
    # exact EUP reciprocal (approx=False) so matches/argmax ties track the ref.
    out_ref[0] = inter * pl.reciprocal(union, approx=False)


def jaccard_pallas(truths, priors_pf):
    # truths: (B, O, 4), priors_pf: (P, 4)  ->  (B, O, P)
    B, O, _ = truths.shape
    P = priors_pf.shape[0]
    full = _round_up(P, 128)
    # Largest prior tile whose double-buffered (priors + out) blocks stay <= ~8 MiB.
    per_lane_bytes = (O + 4) * 4 * 2
    cap = max(128, (8 * 1024 * 1024 // per_lane_bytes) // 128 * 128)
    if full <= cap:
        TP, P_pad = full, full
    else:
        ntiles = _cdiv(full, cap)
        TP = _round_up(_cdiv(full, ntiles), 128)
        P_pad = TP * ntiles
    priors_t = jnp.pad(priors_pf.T, ((0, 0), (0, P_pad - P)))         # (4, P_pad)
    out = pl.pallas_call(
        _iou_kernel,
        out_shape=jax.ShapeDtypeStruct((B, O, P_pad), jnp.float32),
        # prior-tile axis outer, batch inner: the (4, TP) priors tile stays
        # resident across the whole inner batch loop (never re-DMA'd).
        grid=(P_pad // TP, B),
        in_specs=[
            pl.BlockSpec((1, O, 4), lambda p, b: (b, 0, 0)),
            pl.BlockSpec((4, TP), lambda p, b: (0, p)),
        ],
        out_specs=pl.BlockSpec((1, O, TP), lambda p, b: (b, 0, p)),
        compiler_params=pltpu.CompilerParams(
            dimension_semantics=("parallel", "parallel")),
    )(truths, priors_t)
    return out[:, :, :P]


# --------------------------------------------------------------------------
# Kernel B: per-element softmax cross entropy (reduction='none'), lane-dense
# --------------------------------------------------------------------------
def _ce_kernel(conf_ref, label_ref, out_ref, *, use_bf16_exp):
    logits = conf_ref[...]                                            # (C, TN) f32
    labels = label_ref[...]                                           # (1, TN) int32
    m = jnp.max(logits, axis=0, keepdims=True)                        # (1, TN)
    z = logits - m                                                    # <= 0
    if use_bf16_exp:
        # bf16 exp on the EUP (v6e/v7x); sum/log/select stay in f32.
        e = jnp.exp(z.astype(jnp.bfloat16)).astype(jnp.float32)
    else:
        e = jnp.exp(z)
    lse = m + jnp.log(jnp.sum(e, axis=0, keepdims=True))
    cls = jax.lax.broadcasted_iota(jnp.int32, logits.shape, 0)        # class on sublanes
    sel = jnp.sum(jnp.where(cls == labels, logits, 0.0), axis=0, keepdims=True)
    out_ref[...] = lse - sel                                          # (1, TN) unmasked vst


def cross_entropy_pallas(conf2d, labels):
    # conf2d: (N, C) float32, labels: (N,) int32  ->  (N,)
    N, C = conf2d.shape
    TN = min(32768, _round_up(N, 128))
    N_pad = _round_up(N, TN)
    # allow_input_fusion lets XLA fuse this transpose/pad into the operand
    # instead of materializing a separate relayout copy in HBM.
    logits_t = jnp.pad(conf2d.T, ((0, 0), (0, N_pad - N)))            # (C, N_pad)
    labels2d = jnp.pad(labels.astype(jnp.int32), (0, N_pad - N)).reshape(1, N_pad)
    out = pl.pallas_call(
        functools.partial(_ce_kernel, use_bf16_exp=_use_bf16_exp()),
        out_shape=jax.ShapeDtypeStruct((1, N_pad), jnp.float32),
        grid=(N_pad // TN,),
        in_specs=[
            pl.BlockSpec((C, TN), lambda i: (0, i)),
            pl.BlockSpec((1, TN), lambda i: (0, i)),
        ],
        out_specs=pl.BlockSpec((1, TN), lambda i: (0, i)),
        compiler_params=pltpu.CompilerParams(
            dimension_semantics=("parallel",),
            allow_input_fusion=[True, True]),
    )(logits_t, labels2d)
    return out[0, :N]


# --------------------------------------------------------------------------
# Kernel C: masked smooth-L1 sum + masked CE sum (tiled reduction,
#           leading size-2 'parallel' axis so v7x can split across both TCs)
# --------------------------------------------------------------------------
def _loss_kernel(ld_ref, lt_ref, ce_ref, sel_ref, ll_ref, lc_ref):
    @pl.when(pl.program_id(1) == 0)
    def _():
        ll_ref[...] = jnp.zeros_like(ll_ref)
        lc_ref[...] = jnp.zeros_like(lc_ref)

    # Smooth-L1 (beta=1). Positive-mask is already folded into lt (lt == ld at
    # negatives), so no mask stream is needed here.
    diff = ld_ref[...] - lt_ref[...]                                  # (TR4, 128)
    ad = jnp.abs(diff)
    sl1 = jnp.where(ad < 1.0, 0.5 * diff * diff, ad - 0.5)
    r4 = ld_ref.shape[0]
    ll_ref[...] += jnp.sum(sl1.reshape(r4 // 8, 8, 128), axis=0)      # (8, 128) acc

    ce_sel = jnp.where(sel_ref[...] > 0.0, ce_ref[...], 0.0)          # (TR, 128)
    r = ce_ref.shape[0]
    lc_ref[...] += jnp.sum(ce_sel.reshape(r // 8, 8, 128), axis=0)    # (8, 128) acc


def loss_reduce_pallas(loc_data, loc_t, ce, sel_mask):
    # loc_data/loc_t: (N, 4); ce/sel_mask: (N,)
    N = loc_data.shape[0]
    cap = 65536
    steps = _cdiv(N, 2 * cap)
    TN = min(cap, _round_up(_cdiv(N, 2 * steps), 1024))   # multiple of 1024 -> TR % 8 == 0
    N_pad = 2 * TN * steps
    pad = N_pad - N

    R4, R = N_pad * 4 // 128, N_pad // 128
    TR4, TR = TN // 32, TN // 128
    ld = jnp.pad(loc_data.astype(jnp.float32), ((0, pad), (0, 0))).reshape(R4, 128)
    lt = jnp.pad(loc_t.astype(jnp.float32), ((0, pad), (0, 0))).reshape(R4, 128)
    cep = jnp.pad(ce.astype(jnp.float32), (0, pad)).reshape(R, 128)
    selp = jnp.pad(sel_mask.astype(jnp.float32), (0, pad)).reshape(R, 128)

    imap = lambda c, i: (c * steps + i, 0)
    ll, lc = pl.pallas_call(
        _loss_kernel,
        out_shape=(jax.ShapeDtypeStruct((16, 128), jnp.float32),
                   jax.ShapeDtypeStruct((16, 128), jnp.float32)),
        grid=(2, steps),
        in_specs=[
            pl.BlockSpec((TR4, 128), imap),
            pl.BlockSpec((TR4, 128), imap),
            pl.BlockSpec((TR, 128), imap),
            pl.BlockSpec((TR, 128), imap),
        ],
        out_specs=(
            pl.BlockSpec((8, 128), lambda c, i: (c, 0)),
            pl.BlockSpec((8, 128), lambda c, i: (c, 0)),
        ),
        compiler_params=pltpu.CompilerParams(
            dimension_semantics=("parallel", "arbitrary"),
            allow_input_fusion=[True, True, True, True]),
    )(ld, lt, cep, selp)
    return jnp.sum(ll), jnp.sum(lc)


# --------------------------------------------------------------------------
# Plain-JAX glue: point_form / encode / match (scatter, argmax, gathers)
# --------------------------------------------------------------------------
def point_form(boxes):
    return jnp.concatenate(
        [boxes[:, :2] - boxes[:, 2:] / 2, boxes[:, :2] + boxes[:, 2:] / 2], axis=1)


def encode(matched, priors, variances):
    g_cxcy = (matched[:, :2] + matched[:, 2:]) / 2 - priors[:, :2]
    g_cxcy = g_cxcy / (variances[0] * priors[:, 2:])
    g_wh = (matched[:, 2:] - matched[:, :2]) / priors[:, 2:]
    g_wh = jnp.log(g_wh) / variances[1]
    return jnp.concatenate([g_cxcy, g_wh], axis=1)


def match_single(threshold, truths, priors_cs, variances, labels, overlaps, valid):
    # overlaps: (O, P); valid: (O,) gates padded GT rows (label < 0 == padding)
    # TODO(synk): argmax matching + force-assign scatter has no clean Pallas
    # equivalent; it stays in plain JAX.
    O, P = overlaps.shape
    ov = jnp.where(valid[:, None], overlaps, -1.0)
    best_prior_idx = jnp.argmax(ov, axis=1)                      # (O,)
    best_truth_overlap = jnp.max(ov, axis=0)                     # (P,)
    best_truth_idx = jnp.argmax(ov, axis=0)                      # (P,)
    safe_idx = jnp.where(valid, best_prior_idx, P)               # OOB -> dropped
    best_truth_overlap = best_truth_overlap.at[safe_idx].set(2.0, mode="drop")
    best_truth_idx = best_truth_idx.at[safe_idx].set(
        jnp.arange(O, dtype=best_truth_idx.dtype), mode="drop")
    matches = truths[best_truth_idx]                             # (P, 4)
    conf = labels[best_truth_idx].astype(jnp.int32) + 1          # (P,)
    conf = jnp.where(best_truth_overlap < threshold, 0, conf)
    loc = encode(matches, priors_cs, variances)                  # (P, 4)
    return loc, conf


# --------------------------------------------------------------------------
# MultiBoxLoss.forward equivalent
# --------------------------------------------------------------------------
def multibox_loss(loc_data, conf_data, dbox_list, targets,
                  jaccard_thresh=0.5, neg_pos=3):
    """predictions = (loc_data [B,P,4], conf_data [B,P,C], dbox_list [P,4]),
    targets [B, O, 5] = (xmin, ymin, xmax, ymax, label); label < 0 marks padded rows."""
    B, P, _ = loc_data.shape
    C = conf_data.shape[2]
    truths = targets[:, :, :4].astype(jnp.float32)               # (B, O, 4)
    labels = targets[:, :, 4]                                    # (B, O)
    valid = labels >= 0                                          # (B, O)
    variances = (0.1, 0.2)
    priors_pf = point_form(dbox_list).astype(jnp.float32)        # (P, 4)

    # --- matching (IoU matrix on TPU, scatter/argmax glue in JAX) ---
    overlaps = jaccard_pallas(truths, priors_pf)                 # (B, O, P)
    loc_t, conf_t = jax.vmap(
        lambda t, l, ov, v: match_single(jaccard_thresh, t, dbox_list,
                                         variances, l, ov, v)
    )(truths, labels, overlaps, valid)                           # (B,P,4), (B,P)

    pos_mask = conf_t > 0                                        # (B, P)

    # --- per-element cross entropy (Pallas kernel B) ---
    ce = cross_entropy_pallas(conf_data.reshape(B * P, C).astype(jnp.float32),
                              conf_t.reshape(B * P)).reshape(B, P)

    # --- hard negative mining: per-row threshold instead of argsort+scatter ---
    # neg_mask == (rank < num_neg) == (loss >= num_neg-th largest loss);
    # identical to the reference except on exact float ties.
    # TODO(synk): per-row value sort / rank selection has no clean Pallas TPU
    # sort equivalent; it stays in plain JAX (value-only sort, no index scatter).
    ce_for_rank = jnp.where(pos_mask, 0.0, ce)                   # zero positives
    num_pos = jnp.sum(pos_mask.astype(jnp.int32), axis=1, keepdims=True)   # (B,1)
    num_neg = jnp.minimum(num_pos * neg_pos, P)                  # clamp to num_dbox (as spec)
    sorted_desc = -jnp.sort(-ce_for_rank, axis=1)                # (B, P) descending
    thr = jnp.take_along_axis(sorted_desc, jnp.clip(num_neg - 1, 0, P - 1), axis=1)
    neg_mask = jnp.logical_and(ce_for_rank >= thr, num_neg > 0)
    sel_mask = jnp.logical_or(pos_mask, neg_mask)

    # --- masked loss reductions (Pallas kernel C) ---
    # Fold the positive mask into the loc-target stream: at negatives lt == ld,
    # so smooth-L1 contributes exactly 0 (drops the 4x-broadcast mask stream).
    loc_t_m = jnp.where(pos_mask[..., None], loc_t, loc_data)
    loss_l_sum, loss_c_sum = loss_reduce_pallas(
        loc_data.reshape(B * P, 4), loc_t_m.reshape(B * P, 4),
        ce.reshape(B * P), sel_mask.reshape(B * P))

    n_pos = jnp.maximum(jnp.sum(num_pos).astype(jnp.float32), 1.0)  # guard N==0
    return loss_l_sum / n_pos, loss_c_sum / n_pos


# --------------------------------------------------------------------------
if __name__ == "__main__":
    key = jax.random.PRNGKey(0)
    B, P, C, O = 2, 256, 21, 8  # batch, num default boxes, num classes, num objects
    ks = jax.random.split(key, 8)

    # default boxes in center-size form (valid, inside unit square)
    centers = jax.random.uniform(ks[0], (P, 2), minval=0.2, maxval=0.8)
    wh = jax.random.uniform(ks[1], (P, 2), minval=0.1, maxval=0.3)
    dbox_list = jnp.concatenate([centers, wh], axis=1).astype(jnp.float32)   # (P, 4)

    # ground-truth boxes (valid point-form) + integer labels in [0, C-2]
    t_c = jax.random.uniform(ks[2], (B, O, 2), minval=0.25, maxval=0.75)
    t_wh = jax.random.uniform(ks[3], (B, O, 2), minval=0.1, maxval=0.4)
    truths = jnp.concatenate([t_c - t_wh / 2, t_c + t_wh / 2], axis=2)
    labels = jax.random.randint(ks[4], (B, O), 0, C - 1).astype(jnp.float32)
    targets = jnp.concatenate([truths, labels[..., None]], axis=2).astype(jnp.float32)

    # network predictions
    loc_data = (0.1 * jax.random.normal(ks[5], (B, P, 4))).astype(jnp.float32)
    conf_data = jax.random.normal(ks[6], (B, P, C)).astype(jnp.float32)

    fn = jax.jit(multibox_loss)
    loss_l, loss_c = fn(loc_data, conf_data, dbox_list, targets)
    jax.block_until_ready((loss_l, loss_c))
    print("KERNEL_OK")
</pallas_src>

<mosaic_0001>
module attributes {stable_mosaic.version = 11 : i64} {
  func.func @_iou_kernel(%arg0: i32, %arg1: i32, %arg2: memref<1x8x4xf32, #tpu.memory_space<vmem>>, %arg3: memref<4x256xf32, #tpu.memory_space<vmem>>, %arg4: memref<1x8x256xf32, #tpu.memory_space<vmem>>) attributes {dimension_semantics = [#tpu.dimension_semantics<parallel>, #tpu.dimension_semantics<parallel>], iteration_bounds = array<i64: 1, 2>, scalar_prefetch = 0 : i64, scratch_operands = 0 : i64, tpu.core_type = #tpu.core_type<tc>, window_params = [{transform_indices = @transform_0, window_bounds = array<i64: 1, 8, 4>}, {transform_indices = @transform_1, window_bounds = array<i64: 4, 256>}, {transform_indices = @transform_2, window_bounds = array<i64: 1, 8, 256>}]} {
    %c0 = arith.constant 0 : index
    %c0_0 = arith.constant 0 : index
    %c0_1 = arith.constant 0 : index
    %0 = vector.load %arg2[%c0, %c0_0, %c0_1] : memref<1x8x4xf32, #tpu.memory_space<vmem>>, vector<1x8x4xf32>
    %1 = vector.shape_cast %0 : vector<1x8x4xf32> to vector<8x4xf32>
    %2 = vector.extract_strided_slice %1 {offsets = [0, 0], sizes = [8, 1], strides = [1, 1]} : vector<8x4xf32> to vector<8x1xf32>
    %3 = vector.extract_strided_slice %1 {offsets = [0, 1], sizes = [8, 1], strides = [1, 1]} : vector<8x4xf32> to vector<8x1xf32>
    %4 = vector.extract_strided_slice %1 {offsets = [0, 2], sizes = [8, 1], strides = [1, 1]} : vector<8x4xf32> to vector<8x1xf32>
    %5 = vector.extract_strided_slice %1 {offsets = [0, 3], sizes = [8, 1], strides = [1, 1]} : vector<8x4xf32> to vector<8x1xf32>
    %c0_2 = arith.constant 0 : index
    %c0_3 = arith.constant 0 : index
    %6 = vector.load %arg3[%c0_2, %c0_3] : memref<4x256xf32, #tpu.memory_space<vmem>>, vector<1x256xf32>
    %c1 = arith.constant 1 : index
    %c0_4 = arith.constant 0 : index
    %7 = vector.load %arg3[%c1, %c0_4] : memref<4x256xf32, #tpu.memory_space<vmem>>, vector<1x256xf32>
    %c2 = arith.constant 2 : index
    %c0_5 = arith.constant 0 : index
    %8 = vector.load %arg3[%c2, %c0_5] : memref<4x256xf32, #tpu.memory_space<vmem>>, vector<1x256xf32>
    %c3 = arith.constant 3 : index
    %c0_6 = arith.constant 0 : index
    %9 = vector.load %arg3[%c3, %c0_6] : memref<4x256xf32, #tpu.memory_space<vmem>>, vector<1x256xf32>
    %10 = vector.broadcast %4 : vector<8x1xf32> to vector<8x256xf32>
    %11 = vector.broadcast %8 : vector<1x256xf32> to vector<8x256xf32>
    %12 = arith.minimumf %10, %11 : vector<8x256xf32>
    %13 = vector.broadcast %2 : vector<8x1xf32> to vector<8x256xf32>
    %14 = vector.broadcast %6 : vector<1x256xf32> to vector<8x256xf32>
    %15 = arith.maximumf %13, %14 : vector<8x256xf32>
    %16 = arith.subf %12, %15 : vector<8x256xf32>
    %cst = arith.constant 0.000000e+00 : f32
    %17 = vector.broadcast %cst : f32 to vector<8x256xf32>
    %18 = arith.maximumf %16, %17 : vector<8x256xf32>
    %19 = vector.broadcast %5 : vector<8x1xf32> to vector<8x256xf32>
    %20 = vector.broadcast %9 : vector<1x256xf32> to vector<8x256xf32>
    %21 = arith.minimumf %19, %20 : vector<8x256xf32>
    %22 = vector.broadcast %3 : vector<8x1xf32> to vector<8x256xf32>
    %23 = vector.broadcast %7 : vector<1x256xf32> to vector<8x256xf32>
    %24 = arith.maximumf %22, %23 : vector<8x256xf32>
    %25 = arith.subf %21, %24 : vector<8x256xf32>
    %cst_7 = arith.constant 0.000000e+00 : f32
    %26 = vector.broadcast %cst_7 : f32 to vector<8x256xf32>
    %27 = arith.maximumf %25, %26 : vector<8x256xf32>
    %28 = arith.mulf %18, %27 : vector<8x256xf32>
    %29 = arith.subf %4, %2 : vector<8x1xf32>
    %30 = arith.subf %5, %3 : vector<8x1xf32>
    %31 = arith.mulf %29, %30 : vector<8x1xf32>
    %32 = arith.subf %8, %6 : vector<1x256xf32>
    %33 = arith.subf %9, %7 : vector<1x256xf32>
    %34 = arith.mulf %32, %33 : vector<1x256xf32>
    %35 = vector.broadcast %31 : vector<8x1xf32> to vector<8x256xf32>
    %36 = vector.broadcast %34 : vector<1x256xf32> to vector<8x256xf32>
    %37 = arith.addf %35, %36 : vector<8x256xf32>
    %38 = arith.subf %37, %28 : vector<8x256xf32>
    %cst_8 = arith.constant 9.99999996E-13 : f32
    %39 = vector.broadcast %cst_8 : f32 to vector<8x256xf32>
    %40 = arith.maximumf %38, %39 : vector<8x256xf32>
    %41 = tpu.reciprocal %40 : vector<8x256xf32> -> vector<8x256xf32>
    %42 = arith.mulf %28, %41 : vector<8x256xf32>
    %c0_9 = arith.constant 0 : index
    %c0_10 = arith.constant 0 : index
    %c0_11 = arith.constant 0 : index
    %43 = vector.load %arg4[%c0_9, %c0_10, %c0_11] : memref<1x8x256xf32, #tpu.memory_space<vmem>>, vector<1x8x256xf32>
    %44 = vector.shape_cast %43 : vector<1x8x256xf32> to vector<8x256xf32>
    %45 = vector.shape_cast %42 : vector<8x256xf32> to vector<1x8x256xf32>
    tpu.vector_store %arg4[%c0_9, %c0_10, %c0_11], %45 {strides = array<i32>} : memref<1x8x256xf32, #tpu.memory_space<vmem>>, vector<1x8x256xf32>,
    return
  }
  func.func @transform_0(%arg0: i32, %arg1: i32) -> (i32, i32, i32) {
    %c0_i32 = arith.constant 0 : i32
    %c0_i32_0 = arith.constant 0 : i32
    %c0_i32_1 = arith.constant 0 : i32
    return %arg1, %c0_i32, %c0_i32_0 : i32, i32, i32
  }
  func.func @transform_1(%arg0: i32, %arg1: i32) -> (i32, i32) {
    %c0_i32 = arith.constant 0 : i32
    %c0_i32_0 = arith.constant 0 : i32
    return %c0_i32, %arg0 : i32, i32
  }
  func.func @transform_2(%arg0: i32, %arg1: i32) -> (i32, i32, i32) {
    %c0_i32 = arith.constant 0 : i32
    %c0_i32_0 = arith.constant 0 : i32
    return %arg1, %c0_i32, %arg0 : i32, i32, i32
  }
}

module attributes {stable_mosaic.version = 11 : i64} {
  func.func @_ce_kernel(%arg0: i32, %arg1: memref<21x512xf32, #tpu.memory_space<vmem>>, %arg2: memref<1x512xi32, #tpu.memory_space<vmem>>, %arg3: memref<1x512xf32, #tpu.memory_space<vmem>>) attributes {dimension_semantics = [#tpu.dimension_semantics<parallel>], iteration_bounds = array<i64: 1>, scalar_prefetch = 0 : i64, scratch_operands = 0 : i64, tpu.core_type = #tpu.core_type<tc>, window_params = [{transform_indices = @transform_0, window_bounds = array<i64: 21, 512>}, {transform_indices = @transform_1, window_bounds = array<i64: 1, 512>}, {transform_indices = @transform_2, window_bounds = array<i64: 1, 512>}]} {
    %c0 = arith.constant 0 : index
    %c0_0 = arith.constant 0 : index
    %0 = vector.load %arg1[%c0, %c0_0] : memref<21x512xf32, #tpu.memory_space<vmem>>, vector<21x512xf32>
    %c0_1 = arith.constant 0 : index
    %c0_2 = arith.constant 0 : index
    %1 = vector.load %arg2[%c0_1, %c0_2] : memref<1x512xi32, #tpu.memory_space<vmem>>, vector<1x512xi32>
    %cst = arith.constant dense<0xFF800000> : vector<512xf32>
    %2 = vector.multi_reduction <maximumf>, %0, %cst [0] : vector<21x512xf32> to vector<512xf32>
    %3 = vector.shape_cast %2 : vector<512xf32> to vector<1x512xf32>
    %4 = vector.broadcast %3 : vector<1x512xf32> to vector<21x512xf32>
    %5 = arith.subf %0, %4 : vector<21x512xf32>
    %6 = math.exp %5 : vector<21x512xf32>
    %cst_3 = arith.constant dense<0.000000e+00> : vector<512xf32>
    %7 = vector.multi_reduction <add>, %6, %cst_3 [0] : vector<21x512xf32> to vector<512xf32>
    %8 = vector.shape_cast %7 : vector<512xf32> to vector<1x512xf32>
    %9 = math.log %8 : vector<1x512xf32>
    %10 = arith.addf %3, %9 : vector<1x512xf32>
    %11 = tpu.iota {dimensions = array<i32: 0>} : vector<21x512xi32>
    %12 = vector.broadcast %1 : vector<1x512xi32> to vector<21x512xi32>
    %13 = arith.cmpi eq, %11, %12 : vector<21x512xi32>
    %cst_4 = arith.constant 0.000000e+00 : f32
    %14 = vector.broadcast %cst_4 : f32 to vector<21x512xf32>
    %15 = arith.select %13, %0, %14 : vector<21x512xi1>, vector<21x512xf32>
    %cst_5 = arith.constant dense<0.000000e+00> : vector<512xf32>
    %16 = vector.multi_reduction <add>, %15, %cst_5 [0] : vector<21x512xf32> to vector<512xf32>
    %17 = vector.shape_cast %16 : vector<512xf32> to vector<1x512xf32>
    %18 = arith.subf %10, %17 : vector<1x512xf32>
    %c0_6 = arith.constant 0 : index
    %c0_7 = arith.constant 0 : index
    %19 = vector.load %arg3[%c0_6, %c0_7] : memref<1x512xf32, #tpu.memory_space<vmem>>, vector<1x512xf32>
    tpu.vector_store %arg3[%c0_6, %c0_7], %18 {strides = array<i32>} : memref<1x512xf32, #tpu.memory_space<vmem>>, vector<1x512xf32>,
    return
  }
  func.func @transform_0(%arg0: i32) -> (i32, i32) {
    %c0_i32 = arith.constant 0 : i32
    %c0_i32_0 = arith.constant 0 : i32
    return %c0_i32, %arg0 : i32, i32
  }
  func.func @transform_1(%arg0: i32) -> (i32, i32) {
    %c0_i32 = arith.constant 0 : i32
    %c0_i32_0 = arith.constant 0 : i32
    return %c0_i32, %arg0 : i32, i32
  }
  func.func @transform_2(%arg0: i32) -> (i32, i32) {
    %c0_i32 = arith.constant 0 : i32
    %c0_i32_0 = arith.constant 0 : i32
    return %c0_i32, %arg0 : i32, i32
  }
}

module attributes {stable_mosaic.version = 11 : i64} {
  func.func @_loss_kernel(%arg0: i32, %arg1: i32, %arg2: memref<32x128xf32, #tpu.memory_space<vmem>>, %arg3: memref<32x128xf32, #tpu.memory_space<vmem>>, %arg4: memref<8x128xf32, #tpu.memory_space<vmem>>, %arg5: memref<8x128xf32, #tpu.memory_space<vmem>>, %arg6: memref<8x128xf32, #tpu.memory_space<vmem>>, %arg7: memref<8x128xf32, #tpu.memory_space<vmem>>) attributes {dimension_semantics = [#tpu.dimension_semantics<parallel>, #tpu.dimension_semantics<arbitrary>], iteration_bounds = array<i64: 2, 1>, scalar_prefetch = 0 : i64, scratch_operands = 0 : i64, tpu.core_type = #tpu.core_type<tc>, window_params = [{transform_indices = @transform_0, window_bounds = array<i64: 32, 128>}, {transform_indices = @transform_1, window_bounds = array<i64: 32, 128>}, {transform_indices = @transform_2, window_bounds = array<i64: 8, 128>}, {transform_indices = @transform_3, window_bounds = array<i64: 8, 128>}, {transform_indices = @transform_4, window_bounds = array<i64: 8, 128>}, {transform_indices = @transform_5, window_bounds = array<i64: 8, 128>}]} {
    %c0_i32 = arith.constant 0 : i32
    %0 = arith.cmpi eq, %arg1, %c0_i32 : i32
    %1 = arith.extui %0 : i1 to i32
    %c0_i32_0 = arith.constant 0 : i32
    %2 = arith.cmpi ne, %1, %c0_i32_0 : i32
    scf.if %2 {
      %cst_22 = arith.constant 0.000000e+00 : f32
      %31 = vector.broadcast %cst_22 : f32 to vector<8x128xf32>
      %c0_23 = arith.constant 0 : index
      %c0_24 = arith.constant 0 : index
      %32 = vector.load %arg6[%c0_23, %c0_24] : memref<8x128xf32, #tpu.memory_space<vmem>>, vector<8x128xf32>
      tpu.vector_store %arg6[%c0_23, %c0_24], %31 {strides = array<i32>} : memref<8x128xf32, #tpu.memory_space<vmem>>, vector<8x128xf32>,
      %cst_25 = arith.constant 0.000000e+00 : f32
      %33 = vector.broadcast %cst_25 : f32 to vector<8x128xf32>
      %c0_26 = arith.constant 0 : index
      %c0_27 = arith.constant 0 : index
      %34 = vector.load %arg7[%c0_26, %c0_27] : memref<8x128xf32, #tpu.memory_space<vmem>>, vector<8x128xf32>
      tpu.vector_store %arg7[%c0_26, %c0_27], %33 {strides = array<i32>} : memref<8x128xf32, #tpu.memory_space<vmem>>, vector<8x128xf32>,
    } else {
    }
    %c0 = arith.constant 0 : index
    %c0_1 = arith.constant 0 : index
    %3 = vector.load %arg2[%c0, %c0_1] : memref<32x128xf32, #tpu.memory_space<vmem>>, vector<32x128xf32>
    %c0_2 = arith.constant 0 : index
    %c0_3 = arith.constant 0 : index
    %4 = vector.load %arg3[%c0_2, %c0_3] : memref<32x128xf32, #tpu.memory_space<vmem>>, vector<32x128xf32>
    %5 = arith.subf %3, %4 : vector<32x128xf32>
    %6 = math.absf %5 : vector<32x128xf32>
    %cst = arith.constant 1.000000e+00 : f32
    %7 = vector.broadcast %cst : f32 to vector<32x128xf32>
    %8 = arith.cmpf olt, %6, %7 : vector<32x128xf32>
    %cst_4 = arith.constant 5.000000e-01 : f32
    %9 = vector.broadcast %cst_4 : f32 to vector<32x128xf32>
    %10 = arith.mulf %9, %5 : vector<32x128xf32>
    %11 = arith.mulf %10, %5 : vector<32x128xf32>
    %cst_5 = arith.constant 5.000000e-01 : f32
    %12 = vector.broadcast %cst_5 : f32 to vector<32x128xf32>
    %13 = arith.subf %6, %12 : vector<32x128xf32>
    %14 = arith.select %8, %11, %13 : vector<32x128xi1>, vector<32x128xf32>
    %c0_6 = arith.constant 0 : index
    %c0_7 = arith.constant 0 : index
    %15 = vector.load %arg6[%c0_6, %c0_7] : memref<8x128xf32, #tpu.memory_space<vmem>>, vector<8x128xf32>
    %16 = vector.shape_cast %14 : vector<32x128xf32> to vector<4x8x128xf32>
    %cst_8 = arith.constant dense<0.000000e+00> : vector<8x128xf32>
    %17 = vector.multi_reduction <add>, %16, %cst_8 [0] : vector<4x8x128xf32> to vector<8x128xf32>
    %18 = arith.addf %15, %17 : vector<8x128xf32>
    %c0_9 = arith.constant 0 : index
    %c0_10 = arith.constant 0 : index
    %19 = vector.load %arg6[%c0_9, %c0_10] : memref<8x128xf32, #tpu.memory_space<vmem>>, vector<8x128xf32>
    tpu.vector_store %arg6[%c0_9, %c0_10], %18 {strides = array<i32>} : memref<8x128xf32, #tpu.memory_space<vmem>>, vector<8x128xf32>,
    %c0_11 = arith.constant 0 : index
    %c0_12 = arith.constant 0 : index
    %20 = vector.load %arg5[%c0_11, %c0_12] : memref<8x128xf32, #tpu.memory_space<vmem>>, vector<8x128xf32>
    %cst_13 = arith.constant 0.000000e+00 : f32
    %21 = vector.broadcast %cst_13 : f32 to vector<8x128xf32>
    %22 = arith.cmpf ogt, %20, %21 : vector<8x128xf32>
    %c0_14 = arith.constant 0 : index
    %c0_15 = arith.constant 0 : index
    %23 = vector.load %arg4[%c0_14, %c0_15] : memref<8x128xf32, #tpu.memory_space<vmem>>, vector<8x128xf32>
    %cst_16 = arith.constant 0.000000e+00 : f32
    %24 = vector.broadcast %cst_16 : f32 to vector<8x128xf32>
    %25 = arith.select %22, %23, %24 : vector<8x128xi1>, vector<8x128xf32>
    %c0_17 = arith.constant 0 : index
    %c0_18 = arith.constant 0 : index
    %26 = vector.load %arg7[%c0_17, %c0_18] : memref<8x128xf32, #tpu.memory_space<vmem>>, vector<8x128xf32>
    %27 = vector.shape_cast %25 : vector<8x128xf32> to vector<1x8x128xf32>
    %cst_19 = arith.constant dense<0.000000e+00> : vector<8x128xf32>
    %28 = vector.multi_reduction <add>, %27, %cst_19 [0] : vector<1x8x128xf32> to vector<8x128xf32>
    %29 = arith.addf %26, %28 : vector<8x128xf32>
    %c0_20 = arith.constant 0 : index
    %c0_21 = arith.constant 0 : index
    %30 = vector.load %arg7[%c0_20, %c0_21] : memref<8x128xf32, #tpu.memory_space<vmem>>, vector<8x128xf32>
    tpu.vector_store %arg7[%c0_20, %c0_21], %29 {strides = array<i32>} : memref<8x128xf32, #tpu.memory_space<vmem>>, vector<8x128xf32>,
    return
  }
  func.func @transform_0(%arg0: i32, %arg1: i32) -> (i32, i32) {
    %c1_i32 = arith.constant 1 : i32
    %0 = arith.muli %arg0, %c1_i32 : i32
    %1 = arith.addi %0, %arg1 : i32
    %c0_i32 = arith.constant 0 : i32
    %c0_i32_0 = arith.constant 0 : i32
    return %1, %c0_i32 : i32, i32
  }
  func.func @transform_1(%arg0: i32, %arg1: i32) -> (i32, i32) {
    %c1_i32 = arith.constant 1 : i32
    %0 = arith.muli %arg0, %c1_i32 : i32
    %1 = arith.addi %0, %arg1 : i32
    %c0_i32 = arith.constant 0 : i32
    %c0_i32_0 = arith.constant 0 : i32
    return %1, %c0_i32 : i32, i32
  }
  func.func @transform_2(%arg0: i32, %arg1: i32) -> (i32, i32) {
    %c1_i32 = arith.constant 1 : i32
    %0 = arith.muli %arg0, %c1_i32 : i32
    %1 = arith.addi %0, %arg1 : i32
    %c0_i32 = arith.constant 0 : i32
    %c0_i32_0 = arith.constant 0 : i32
    return %1, %c0_i32 : i32, i32
  }
  func.func @transform_3(%arg0: i32, %arg1: i32) -> (i32, i32) {
    %c1_i32 = arith.constant 1 : i32
    %0 = arith.muli %arg0, %c1_i32 : i32
    %1 = arith.addi %0, %arg1 : i32
    %c0_i32 = arith.constant 0 : i32
    %c0_i32_0 = arith.constant 0 : i32
    return %1, %c0_i32 : i32, i32
  }
  func.func @transform_4(%arg0: i32, %arg1: i32) -> (i32, i32) {
    %c0_i32 = arith.constant 0 : i32
    %c0_i32_0 = arith.constant 0 : i32
    return %arg0, %c0_i32 : i32, i32
  }
  func.func @transform_5(%arg0: i32, %arg1: i32) -> (i32, i32) {
    %c0_i32 = arith.constant 0 : i32
    %c0_i32_0 = arith.constant 0 : i32
    return %arg0, %c0_i32 : i32, i32
  }
}

</mosaic_0001>

<bundles_post_ra>
// kernel: multibox_loss.5
= control target key start
LH: loop header
LB: loop body
LE: loop exit
PB: predicated region body
PF: predicated region fallthrough
CT: control target
= control target key end

     0   :  { %s509_s9 = smov 0   ;;  %s511_s10 = smov 0   ;;  %s558_s0 = inlined_call_operand.vmem [shape: f32[2,8,4], index: 0, kind: input, shape index: {}]   ;;  %s559_s1 = inlined_call_operand.vmem [shape: f32[4,256], index: 1, kind: input, shape index: {}]   ;;  %s560_s2 = inlined_call_operand.vmem [shape: f32[2,8,256], index: 2, kind: output, shape index: {}]  }
   0x1   :  { %s513_s11 = smov 0  }
   0x2 LB: > { %s21_s12 = sadd.s32 1, %s482_s10  ;;  %p414_p0 = scmp.ge.s32.totalorder %s486_s11, 1  ;;  %s486_s11 = sphi %s513_s11, %s12_s11   ;;  %s482_s10 = sphi %s511_s10, %s562_s10   ;;  %s478_s9 = sphi %s509_s9, %s561_s9  }
   0x3   : > { %p22_p1 = scmp.ge.s32.totalorder %s21_s12, 2  ;;  %p136_p2 = scmp.lt.s32.totalorder %s486_s11, 3 }
   0x5   : > { %s564_s12 = smov (%p22_p1, %s21_s12), 0  ;;  %p137_p3 = pnand %p414_p0, %p136_p2 }
   0x6   : > { %p166_p4 = scmp.lt.s32.totalorder (!%p137_p3), %s478_s9, 1  ;;  %v488_v0 = vmov (!%p137_p3), 2   ;;  %v489_v1 = vmov (!%p137_p3), 3   ;;  %s490_s17 = smov (!%p137_p3), 2   ;;  %v491_v3 = vmov (!%p137_p3), 0   ;;  %v492_v4 = vmov (!%p137_p3), 1  }
   0x7   : > { %140 = sbr.rel (%p137_p3) target bundleno = 401 (0x191), region = 28  ;;  %454 = vset.pattern.permute.xlu1 (!%p137_p3), %v488_v0  ;;  %456 = vset.pattern.permute.xlu0 (!%p137_p3), %v489_v1  ;;  %s493_s18 = smov (!%p137_p3), 127   ;;  %v200_v9 = vlaneseq (!%p137_p3)  ;;  %v419_v15 = vld [vmem:[%s559_s1 + $0x2] ss:$4 sm:$0x3] (!%p137_p3) }
   0x8   : > { %v187_v16 = vld [vmem:[%s559_s1] ss:$4 sm:$0x3] (!%p137_p3)  ;;  %v418_v17 = vld [vmem:[%s559_s1 + $0x1] ss:$4 sm:$0x3] (!%p137_p3) }
   0x9   : > { %v201_v11 = vshrl.u32 (!%p137_p3), %v200_v9, 7  ;;  %v420_v18 = vld [vmem:[%s559_s1 + $0x3] ss:$4 sm:$0x3] (!%p137_p3)  ;;  %v282_v29 = vsub.f32 (!%p137_p3), %v419_v15, %v187_v16 }
   0xa   : > { %v283_v30 = vsub.f32 (!%p137_p3), %v420_v18, %v418_v17 }
   0xb   : > { %v202_v12 = vsub.s32 (!%p137_p3), 0, %v201_v11  ;;  %v206_v13 = vsub.s32 (!%p137_p3), 1, %v201_v11 }
   0xc   : > { %v284_v39 = vmul.f32 (!%p137_p3), %v283_v30, %v282_v29 }
   0xd   : > { %v203_v19 = vrot.slane (!%p137_p3), %v419_v15, %v202_v12  ;;  %v207_v20 = vrot.slane (!%p137_p3), %v419_v15, %v206_v13  ;;  %v220_v21 = vrot.slane (!%p137_p3), %v187_v16, %v202_v12  ;;  %v224_v22 = vrot.slane (!%p137_p3), %v187_v16, %v206_v13 }
   0xe   : > { %s566_s9 = smov (!%p166_p4, %s478_s9), 1  ;;  %v258_v23 = vrot.slane %v418_v17, %v202_v12  ;;  %v262_v24 = vrot.slane %v418_v17, %v206_v13  ;;  %v241_v25 = vrot.slane %v420_v18, %v202_v12  ;;  %v245_v26 = vrot.slane %v420_v18, %v206_v13 }
   0xf   : > { %s415_s13 = sshll.u32 %s566_s9, 3  ;;  %v294_v44 = vrot.slane %v284_v39, %v202_v12  ;;  %v298_v45 = vrot.slane %v284_v39, %v206_v13  ;;  %s423_s27 = sshll.u32 %s566_s9, 4 }
  0x10   : > { %s169_s16 = scalar_lea.vmem %s558_s0, %s415_s13  ;;  %s184_s30 = scalar_lea.vmem %s560_s2, %s423_s27 }
  0x11   : > { %v186_v2 = vld [vmem:[%s169_s16] sm:$0xff] }
  0x12   : > { %273 = vrot.lane.b32.xlu0 %v186_v2, %s490_s17  ;;  %196 = vperm.xlu1 %454, %v186_v2  }
  0x16   : > { %455 = vset.pattern.permute.xlu1 %v491_v3 }
  0x17   : > { %213 = vperm.xlu1 %455, %v186_v2  }
  0x1b   : > { %457 = vset.pattern.permute.xlu1 %v492_v4 }
  0x1c   : > { %251 = vperm.xlu1 %457, %v186_v2  }
  0x20   : > { %458 = vset.pattern.permute.xlu1 %v488_v0 }
  0x84   : > { %v274_v5 = vpop.permute.xlu0 %273 }
  0x85   : > { %v276_v6 = vsub.f32 %v186_v2, %v274_v5 }
  0x87   : > { %278 = vrot.lane.b32.xlu0 %v276_v6, %s493_s18 }
  0x8b   : > { %234 = vperm.xlu0 %456, %v186_v2  }
  0x8f   : > { %459 = vset.pattern.permute.xlu0 %v488_v0 }
  0x91   : > { %v197_v10 = vpop.permute.xlu1 %196 }
  0x92   : > { %v210_v31 = vmin.f32 %v197_v10, %v203_v19  ;;  %v211_v32 = vmin.f32 %v197_v10, %v207_v20 }
  0x96   : > { %v214_v14 = vpop.permute.xlu1 %213 }
  0x97   : > { %v227_v33 = vmax.f32 %v214_v14, %v220_v21  ;;  %v228_v34 = vmax.f32 %v214_v14, %v224_v22 }
  0x99   : > { %v229_v40 = vsub.f32 %v210_v31, %v227_v33  ;;  %v230_v41 = vsub.f32 %v211_v32, %v228_v34 }
  0x9b   : > { %v252_v27 = vpop.permute.xlu1 %251  ;;  %v231_v46 = vmax.f32 %v229_v40, 0.0  ;;  %v232_v47 = vmax.f32 %v230_v41, 0.0 }
  0x9c   : > { %v265_v35 = vmax.f32 %v252_v27, %v258_v23  ;;  %v266_v36 = vmax.f32 %v252_v27, %v262_v24 }
  0xf9   : > { %v279_v7 = vpop.permute.xlu0 %278 }
  0xfa   : > { %v281_v8 = vmul.f32 %v279_v7, %v276_v6 }
  0xfc   : > { %287 = vperm.xlu1 %458, %v281_v8  }
 0x10a   : > { %v235_v28 = vpop.permute.xlu0 %234 }
 0x10b   : > { %v248_v37 = vmin.f32 %v235_v28, %v241_v25  ;;  %v249_v38 = vmin.f32 %v235_v28, %v245_v26 }
 0x10d   : > { %v267_v42 = vsub.f32 %v248_v37, %v265_v35  ;;  %v268_v43 = vsub.f32 %v249_v38, %v266_v36 }
 0x10f   : > { %v269_v48 = vmax.f32 %v267_v42, 0.0  ;;  %v270_v49 = vmax.f32 %v268_v43, 0.0 }
 0x111   : > { %v271_v51 = vmul.f32 %v269_v48, %v231_v46  ;;  %v272_v52 = vmul.f32 %v270_v49, %v232_v47 }
 0x17b   : > { %v288_v50 = vpop.permute.xlu1 %287 }
 0x17c   : > { %v301_v53 = vadd.f32 %v294_v44, %v288_v50  ;;  %v302_v54 = vadd.f32 %v298_v45, %v288_v50 }
 0x17e   : > { %v303_v55 = vsub.f32 %v301_v53, %v271_v51  ;;  %v304_v56 = vsub.f32 %v302_v54, %v272_v52 }
 0x180   : > { %v305_v57 = vmax.f32 %v303_v55, 1e-12  ;;  %v306_v58 = vmax.f32 %v304_v56, 1e-12 }
 0x182   : > { %460 = vrcp.f32 %v305_v57 }
 0x183   : > { %462 = vrcp.f32 %v306_v58 }
 0x18c   : > { %v461_v59 = vpop.eup %460 }
 0x18d   : > { %v463_v60 = vpop.eup %462  ;;  %v309_v61 = vmul.f32 %v461_v59, %v271_v51 }
 0x18e   : > { %v310_v62 = vmul.f32 %v463_v60, %v272_v52 }
 0x18f   : > { %311 = vst [vmem:[%s184_s30] sm:$0xff] %v309_v61 }
 0x190   : > { %312 = vst [vmem:[%s184_s30 + $0x8] sm:$0xff] %v310_v62 }
 0x191 PF: > { %s12_s11 = sadd.s32 1, %s486_s11   ;;  %s561_s9 = smov %s482_s10 }
 0x192   : > { %p9_p5 = scmp.ge.s32.totalorder %s12_s11, 4   ;;  %s562_s10 = smov %s564_s12 }
 0x194   :  { %11 = sbr.rel (!%p9_p5) target bundleno = 2 (0x2), region = 64 }

// kernel: multibox_loss.6
= control target key start
LH: loop header
LB: loop body
LE: loop exit
PB: predicated region body
PF: predicated region fallthrough
CT: control target
= control target key end

     0   :  { %v203_v3 = vlaneseq  ;;  %vm83_vm0 = vcmask 1044480   ;;  %s588_s0 = inlined_call_operand.vmem [shape: s32[1,512], index: 0, kind: input, shape index: {}]   ;;  %s589_s1 = inlined_call_operand.vmem [shape: f32[512,21], index: 1, kind: input, shape index: {}]   ;;  %s590_s2 = inlined_call_operand.vmem [shape: f32[1,512], index: 2, kind: output, shape index: {}]  }
   0x1   :  { %v388_v0 = vld [vmem:[%s589_s1] sm:$0xff]  ;;  %v393_v1 = vld [vmem:[%s589_s1 + $0x8] sm:$0xff]  ;;  %v398_v2 = vld [vmem:[%s589_s1 + $0x10] sm:$0xff] }
   0x2   :  { %v403_v4 = vld [vmem:[%s589_s1 + $0x18] sm:$0xff]  ;;  %v408_v5 = vld [vmem:[%s589_s1 + $0x20] sm:$0xff]  ;;  %v413_v6 = vld [vmem:[%s589_s1 + $0x28] sm:$0xff]  ;;  %v429_v10 = vshrl.u32 %v203_v3, 7  ;;  %vm318_vm13 = vcmp.lt.s32.totalorder %v203_v3, 512 }
   0x3   :  { %v418_v7 = vld [vmem:[%s589_s1 + $0x30] sm:$0xff]  ;;  %v423_v8 = vld [vmem:[%s589_s1 + $0x38] sm:$0xff]  ;;  %v332_v9 = vld [vmem:[%s589_s1 + $0x40] sm:$0xff]  ;;  %v82_v22 = vmax.f32 %v388_v0, %v408_v5  ;;  %v92_v23 = vmax.f32 %v393_v1, %v413_v6 }
   0x4   :  { %53 = vst [vmem:[#allocation2 + $0x40] sm:$0xff] %v332_v9  ;;  %v333_v11 = vld [vmem:[%s589_s1 + $0x48] sm:$0xff]  ;;  %v334_v12 = vld [vmem:[%s589_s1 + $0x50] sm:$0xff]  ;;  %v335_v13 = vld [vmem:[%s589_s1 + $0x58] sm:$0xff]  ;;  %v209_v15 = vsub.s32 0, %v429_v10  ;;  %v213_v16 = vsub.s32 1, %v429_v10  ;;  %v101_v24 = vmax.f32 %v398_v2, %v418_v7  ;;  %v110_v25 = vmax.f32 %v403_v4, %v423_v8 }
   0x5   :  { %58 = vst [vmem:[#allocation2 + $0x48] sm:$0xff] %v333_v11  ;;  %63 = vst [vmem:[#allocation2 + $0x50] sm:$0xff] %v334_v12  ;;  %v81_v14 = vld [vmem:[%s588_s0] sm:$0xf]  ;;  %v217_v17 = vsub.s32 2, %v429_v10  ;;  %v221_v18 = vsub.s32 3, %v429_v10 }
   0x6   :  { %68 = vst [vmem:[#allocation2 + $0x58] sm:$0xff] %v335_v13  ;;  %v205_v19 = vadd.s32 8, %v429_v10  ;;  %v448_v20 = vrot.slane %v81_v14, %v209_v15  ;;  %v450_v21 = vrot.slane %v81_v14, %v213_v16 }
   0x7   :  { %v462_v27 = vrot.slane %v81_v14, %v217_v17  ;;  %v464_v28 = vrot.slane %v81_v14, %v221_v18 }
   0x8   :  { %vm223_vm1 = vcmp.eq.s32.totalorder %v429_v10, %v448_v20  ;;  %vm224_vm2 = vcmp.eq.s32.totalorder %v429_v10, %v450_v21  ;;  %vm227_vm3 = vcmp.eq.s32.totalorder %v205_v19, %v448_v20  ;;  %vm228_vm4 = vcmp.eq.s32.totalorder %v205_v19, %v450_v21 }
   0x9   :  { %vm225_vm5 = vcmp.eq.s32.totalorder %v429_v10, %v462_v27  ;;  %vm226_vm6 = vcmp.eq.s32.totalorder %v429_v10, %v464_v28  ;;  %vm229_vm7 = vcmp.eq.s32.totalorder %v205_v19, %v462_v27  ;;  %vm230_vm8 = vcmp.eq.s32.totalorder %v205_v19, %v464_v28 }
   0xa   :  { %v235_v44 = vsel %vm223_vm1, %v388_v0, 0.0  ;;  %v236_v45 = vsel %vm224_vm2, %v393_v1, 0.0  ;;  %v239_v46 = vsel %vm227_vm3, %v408_v5, 0.0  ;;  %v240_v47 = vsel %vm228_vm4, %v413_v6, 0.0 }
   0xb   :  { %v460_v26 = vld [vmem:[#allocation2 + $0x40] sm:$0x1f]  ;;  %v237_v52 = vsel %vm225_vm5, %v398_v2, 0.0  ;;  %v241_v53 = vsel %vm229_vm7, %v418_v7, 0.0  ;;  %v238_v58 = vsel %vm226_vm6, %v403_v4, 0.0  ;;  %v242_v59 = vsel %vm230_vm8, %v423_v8, 0.0 }
   0xc   :  { %v466_v29 = vld [vmem:[#allocation2 + $0x48] sm:$0x1f]  ;;  %v468_v30 = vld [vmem:[#allocation2 + $0x50] sm:$0x1f]  ;;  %v84_v32 = vsel %vm83_vm0, %v460_v26, -inf  ;;  %v518_v60 = vadd.f32 %v239_v46, %v235_v44  ;;  %v520_v61 = vadd.f32 %v240_v47, %v236_v45  ;;  %v522_v12 = vadd.f32 %v241_v53, %v237_v52 }
   0xd   :  { %v470_v31 = vld [vmem:[#allocation2 + $0x58] sm:$0x1f]  ;;  %v93_v33 = vsel %vm83_vm0, %v466_v29, -inf  ;;  %v102_v34 = vsel %vm83_vm0, %v468_v30, -inf  ;;  %v85_v36 = vmax.f32 %v82_v22, %v84_v32  ;;  %v524_v17 = vadd.f32 %v242_v59, %v238_v58 }
   0xe   :  { %v111_v35 = vsel %vm83_vm0, %v470_v31, -inf  ;;  %v94_v37 = vmax.f32 %v92_v23, %v93_v33  ;;  %v103_v38 = vmax.f32 %v101_v24, %v102_v34  ;;  %v206_v46 = vadd.s32 16, %v429_v10 }
   0xf   :  { %v112_v39 = vmax.f32 %v110_v25, %v111_v35  ;;  %v86_v40 = vrot.slane %v85_v36, 4 }
  0x10   :  { %v95_v41 = vrot.slane %v94_v37, 4  ;;  %v104_v42 = vrot.slane %v103_v38, 4  ;;  %vm231_vm9 = vcmp.eq.s32.totalorder %v206_v46, %v448_v20  ;;  %vm232_vm10 = vcmp.eq.s32.totalorder %v206_v46, %v450_v21 }
  0x11   :  { %v113_v43 = vrot.slane %v112_v39, 4  ;;  %v87_v48 = vmax.f32 %v85_v36, %v86_v40  ;;  %vm233_vm11 = vcmp.eq.s32.totalorder %v206_v46, %v462_v27  ;;  %vm234_vm12 = vcmp.eq.s32.totalorder %v206_v46, %v464_v28 }
  0x12   :  { %v96_v49 = vmax.f32 %v94_v37, %v95_v41  ;;  %v105_v50 = vmax.f32 %v103_v38, %v104_v42  ;;  %v243_v53 = vsel %vm231_vm9, %v460_v26, 0.0  ;;  %v245_v59 = vsel %vm233_vm11, %v468_v30, 0.0 }
  0x13   :  { %v114_v51 = vmax.f32 %v112_v39, %v113_v43  ;;  %v88_v54 = vrot.slane %v87_v48, 2  ;;  %v246_v21 = vsel %vm234_vm12, %v470_v31, 0.0 }
  0x14   :  { %v97_v55 = vrot.slane %v96_v49, 2  ;;  %v106_v56 = vrot.slane %v105_v50, 2 }
  0x15   :  { %v115_v57 = vrot.slane %v114_v51, 2  ;;  %v89_v62 = vmax.f32 %v87_v48, %v88_v54 }
  0x16   :  { %v98_v63 = vmax.f32 %v96_v49, %v97_v55  ;;  %v107_v9 = vmax.f32 %v105_v50, %v106_v56  ;;  %v244_v56 = vsel %vm232_vm10, %v466_v29, 0.0 }
  0x17   :  { %v116_v11 = vmax.f32 %v114_v51, %v115_v57  ;;  %v90_v13 = vrot.slane %v89_v62, 1 }
  0x18   :  { %v99_v14 = vrot.slane %v98_v63, 1  ;;  %v108_v15 = vrot.slane %v107_v9, 1 }
  0x19   :  { %v117_v16 = vrot.slane %v116_v11, 1  ;;  %v526_v18 = vmax.f32 %v89_v62, %v90_v13 }
  0x1a   :  { %v528_v19 = vmax.f32 %v98_v63, %v99_v14  ;;  %v530_v22 = vmax.f32 %v107_v9, %v108_v15  ;;  %v248_v63 = vsel %vm83_vm0, %v243_v53, 0.0  ;;  %v266_v14 = vsel %vm83_vm0, %v245_v59, 0.0 }
  0x1b   :  { %v532_v23 = vmax.f32 %v116_v11, %v117_v16  ;;  %v119_v24 = vsub.f32 %v388_v0, %v526_v18  ;;  %v123_v34 = vsub.f32 %v408_v5, %v526_v18 }
  0x1c   :  { %v120_v25 = vsub.f32 %v393_v1, %v528_v19  ;;  %v121_v32 = vsub.f32 %v398_v2, %v530_v22  ;;  %v124_v35 = vsub.f32 %v413_v6, %v528_v19  ;;  %v125_v36 = vsub.f32 %v418_v7, %v530_v22 }
  0x1d   :  { %v122_v33 = vsub.f32 %v403_v4, %v532_v23  ;;  %v131_v37 = vmul.f32 1.442695, %v119_v24  ;;  %v126_v1 = vsub.f32 %v423_v8, %v532_v23  ;;  %v127_v2 = vsub.f32 %v460_v26, %v526_v18 }
  0x1e   :  { %v133_v0 = vmul.f32 1.442695, %v120_v25  ;;  %v135_v38 = vmul.f32 1.442695, %v121_v32  ;;  %v139_v4 = vmul.f32 1.442695, %v123_v34  ;;  %v128_v5 = vsub.f32 %v466_v29, %v528_v19 }
  0x1f   :  { %v137_v39 = vmul.f32 1.442695, %v122_v33  ;;  %337 = vpow2.f32 %v131_v37  ;;  %v141_v6 = vmul.f32 1.442695, %v124_v35  ;;  %v129_v7 = vsub.f32 %v468_v30, %v530_v22 }
  0x20   :  { %339 = vpow2.f32 %v133_v0  ;;  %v143_v40 = vmul.f32 1.442695, %v125_v36  ;;  %v130_v41 = vsub.f32 %v470_v31, %v532_v23  ;;  %v145_v8 = vmul.f32 1.442695, %v126_v1 }
  0x21   :  { %341 = vpow2.f32 %v135_v38  ;;  %v147_v42 = vmul.f32 1.442695, %v127_v2  ;;  %v149_v43 = vmul.f32 1.442695, %v128_v5  ;;  %v151_v44 = vmul.f32 1.442695, %v129_v7 }
  0x22   :  { %343 = vpow2.f32 %v137_v39  ;;  %v153_v45 = vmul.f32 1.442695, %v130_v41  ;;  %v257_v26 = vsel %vm83_vm0, %v244_v56, 0.0  ;;  %v249_v31 = vadd.f32 %v248_v63, %v518_v60 }
  0x23   :  { %345 = vpow2.f32 %v139_v4  ;;  %v275_v24 = vsel %vm83_vm0, %v246_v21, 0.0  ;;  %v258_v34 = vadd.f32 %v257_v26, %v520_v61  ;;  %v267_v37 = vadd.f32 %v266_v14, %v522_v12 }
  0x24   :  { %347 = vpow2.f32 %v141_v6  ;;  %v276_v1 = vadd.f32 %v275_v24, %v524_v17  ;;  %v250_v4 = vrot.slane %v249_v31, 4  ;;  %v369_v26 = vmov 1966171168  }
  0x25   :  { %349 = vpow2.f32 %v143_v40  ;;  %v259_v6 = vrot.slane %v258_v34, 4  ;;  %v268_v41 = vrot.slane %v267_v37, 4 }
  0x26   :  { %351 = vpow2.f32 %v145_v8  ;;  %v277_v61 = vrot.slane %v276_v1, 4 }
  0x27   :  { %353 = vpow2.f32 %v147_v42 }
  0x28   :  { %355 = vpow2.f32 %v149_v43 }
  0x29   :  { %v338_v47 = vpop.eup %337  ;;  %357 = vpow2.f32 %v151_v44 }
  0x2a   :  { %v340_v48 = vpop.eup %339  ;;  %359 = vpow2.f32 %v153_v45  ;;  %v251_v45 = vadd.f32 %v250_v4, %v249_v31 }
  0x2b   :  { %v342_v49 = vpop.eup %341 }
  0x2c   :  { %v344_v50 = vpop.eup %343 }
  0x2d   :  { %v346_v51 = vpop.eup %345 }
  0x2e   :  { %v348_v52 = vpop.eup %347  ;;  %v155_v55 = vadd.f32 %v346_v51, %v338_v47  ;;  %v260_v47 = vadd.f32 %v259_v6, %v258_v34 }
  0x2f   :  { %v350_v54 = vpop.eup %349  ;;  %v164_v58 = vadd.f32 %v348_v52, %v340_v48  ;;  %v278_v52 = vadd.f32 %v277_v61, %v276_v1 }
  0x30   :  { %v352_v57 = vpop.eup %351  ;;  %v173_v62 = vadd.f32 %v350_v54, %v342_v49  ;;  %v269_v49 = vadd.f32 %v268_v41, %v267_v37 }
  0x31   :  { %v354_v20 = vpop.eup %353  ;;  %v182_v28 = vadd.f32 %v352_v57, %v344_v50  ;;  %v261_v57 = vrot.slane %v260_v47, 2 }
  0x32   :  { %v356_v27 = vpop.eup %355  ;;  %v156_v9 = vsel %vm83_vm0, %v354_v20, 0.0  ;;  %v270_v59 = vrot.slane %v269_v49, 2  ;;  %v279_v20 = vrot.slane %v278_v52, 2 }
  0x33   :  { %v358_v11 = vpop.eup %357  ;;  %v157_v13 = vadd.f32 %v156_v9, %v155_v55  ;;  %v165_v29 = vsel %vm83_vm0, %v356_v27, 0.0  ;;  %v252_v55 = vrot.slane %v251_v45, 2  ;;  %v262_v21 = vadd.f32 %v261_v57, %v260_v47 }
  0x34   :  { %v360_v15 = vpop.eup %359  ;;  %v166_v30 = vadd.f32 %v165_v29, %v164_v58  ;;  %v174_v16 = vsel %vm83_vm0, %v358_v11, 0.0  ;;  %v271_v63 = vadd.f32 %v270_v59, %v269_v49  ;;  %v280_v27 = vadd.f32 %v279_v20, %v278_v52 }
  0x35   :  { %v158_v25 = vrot.slane %v157_v13, 4  ;;  %v175_v32 = vadd.f32 %v174_v16, %v173_v62  ;;  %v183_v33 = vsel %vm83_vm0, %v360_v15, 0.0  ;;  %v253_v62 = vadd.f32 %v252_v55, %v251_v45 }
  0x36   :  { %v167_v35 = vrot.slane %v166_v30, 4  ;;  %v184_v36 = vadd.f32 %v183_v33, %v182_v28  ;;  %v263_v28 = vrot.slane %v262_v21, 1  ;;  %v294_v11 = vunpack.c.l.s4 %v369_v26 }
  0x37   :  { %v159_v0 = vadd.f32 %v158_v25, %v157_v13  ;;  %v176_v38 = vrot.slane %v175_v32, 4  ;;  %v254_v9 = vrot.slane %v253_v62, 1  ;;  %v272_v13 = vrot.slane %v271_v63, 1 }
  0x38   :  { %v168_v39 = vadd.f32 %v167_v35, %v166_v30  ;;  %v185_v2 = vrot.slane %v184_v36, 4  ;;  %v281_v14 = vrot.slane %v280_v27, 1  ;;  %v264_v25 = vadd.f32 %v263_v28, %v262_v21 }
  0x39   :  { %v160_v60 = vrot.slane %v159_v0, 2  ;;  %v177_v5 = vadd.f32 %v176_v38, %v175_v32  ;;  %v255_v16 = vadd.f32 %v254_v9, %v253_v62  ;;  %v295_v32 = vunpack.c.0.s8 %v294_v11 }
  0x3a   :  { %v169_v7 = vrot.slane %v168_v39, 2  ;;  %v186_v40 = vadd.f32 %v185_v2, %v184_v36  ;;  %v273_v36 = vadd.f32 %v272_v13, %v271_v63  ;;  %v282_v38 = vadd.f32 %v281_v14, %v280_v27 }
  0x3b   :  { %v161_v8 = vadd.f32 %v160_v60, %v159_v0  ;;  %v178_v42 = vrot.slane %v177_v5, 2  ;;  %v298_v60 = vsub.s32 %v295_v32, %v429_v10 }
  0x3c   :  { %v170_v43 = vadd.f32 %v169_v7, %v168_v39  ;;  %v187_v44 = vrot.slane %v186_v40, 2 }
  0x3d   :  { %v162_v12 = vrot.slane %v161_v8, 1  ;;  %v179_v46 = vadd.f32 %v178_v42, %v177_v5 }
  0x3e   :  { %v171_v48 = vrot.slane %v170_v43, 1  ;;  %v188_v17 = vadd.f32 %v187_v44, %v186_v40 }
  0x3f   :  { %v163_v50 = vadd.f32 %v162_v12, %v161_v8  ;;  %v180_v51 = vrot.slane %v179_v46, 1 }
  0x40   :  { %v172_v53 = vadd.f32 %v171_v48, %v170_v43  ;;  %v189_v54 = vrot.slane %v188_v17, 1 }
  0x41   :  { %v181_v56 = vadd.f32 %v180_v51, %v179_v46  ;;  %361 = vlog2.f32 %v163_v50 }
  0x42   :  { %v190_v58 = vadd.f32 %v189_v54, %v188_v17  ;;  %363 = vlog2.f32 %v172_v53 }
  0x43   :  { %365 = vlog2.f32 %v181_v56 }
  0x44   :  { %367 = vlog2.f32 %v190_v58 }
  0x4b   :  { %v362_v29 = vpop.eup %361 }
  0x4c   :  { %v364_v15 = vpop.eup %363  ;;  %v192_v30 = vmul.f32 0.6931472, %v362_v29 }
  0x4d   :  { %v366_v31 = vpop.eup %365  ;;  %v194_v24 = vmul.f32 0.6931472, %v364_v15 }
  0x4e   :  { %v368_v33 = vpop.eup %367  ;;  %v196_v34 = vmul.f32 0.6931472, %v366_v31  ;;  %v199_v35 = vadd.f32 %v192_v30, %v526_v18 }
  0x4f   :  { %v198_v37 = vmul.f32 0.6931472, %v368_v33  ;;  %v200_v0 = vadd.f32 %v194_v24, %v528_v19 }
  0x50   :  { %v201_v1 = vadd.f32 %v196_v34, %v530_v22  ;;  %v283_v39 = vsub.f32 %v199_v35, %v255_v16 }
  0x51   :  { %v202_v2 = vadd.f32 %v198_v37, %v532_v23  ;;  %v284_v4 = vsub.f32 %v200_v0, %v264_v25 }
  0x52   :  { %v285_v5 = vsub.f32 %v201_v1, %v273_v36 }
  0x53   :  { %v286_v6 = vsub.f32 %v202_v2, %v282_v38  ;;  %v291_v7 = vcombine.low %v283_v39, %v284_v4 }
  0x55   :  { %v292_v40 = vcombine.low %v285_v5, %v286_v6  ;;  %v299_v41 = vrot.slane %v291_v7, %v298_v60 }
  0x57   :  { %v306_v8 = vrot.slane %v292_v40, %v298_v60 }
  0x59   :  { %v307_v18 = vcombine.low %v299_v41, %v306_v8 }
  0x5b   :  { %v314_v42 = vrot.slane %v307_v18, %v298_v60 }
  0x5d   :  { %320 = vst.msk [vmem:[%s590_s2] sm:$0xf] %vm318_vm13, %v314_v42 }

// kernel: squeeze.4
= control target key start
LH: loop header
LB: loop body
LE: loop exit
PB: predicated region body
PF: predicated region fallthrough
CT: control target
= control target key end

     0   :  { %s41_s0 = inlined_call_operand.vmem [shape: f32[512], index: 0, kind: input, shape index: {}]   ;;  %s42_s1 = inlined_call_operand.vmem [shape: f32[2,256], index: 1, kind: output, shape index: {}]  }
   0x1   :  { %v4_v0 = vld [vmem:[%s41_s0] sm:$0xf] }
   0x2   :  { %5 = vst [vmem:[#allocation1] sm:$0xf] %v4_v0 }
   0x9   :  { %v6_v1 = vld [vmem:[#allocation1] sm:$0xf]  }
   0xa   :  { %7 = vst [vmem:[#allocation0] ss:$8 sm:$0x3] %v6_v1   ;;  %9 = vst [vmem:[#allocation0 - $0xf] ss:$8 sm:$0xc] %v6_v1  }
  0x11   :  { %v13_v2 = vld [vmem:[#allocation0] sm:$0x3]  ;;  %v17_v3 = vld [vmem:[#allocation0 + $0x8] sm:$0x3] }
  0x12   :  { %15 = vst [vmem:[%s42_s1] sm:$0x3] %v13_v2  ;;  %21 = vst [vmem:[%s42_s1 + $0x2] sm:$0x3] %v17_v3 }

// kernel: neg.3
= control target key start
LH: loop header
LB: loop body
LE: loop exit
PB: predicated region body
PF: predicated region fallthrough
CT: control target
= control target key end

     0   :  { %s40_s0 = inlined_call_operand.vmem [shape: f32[2,256], index: 0, kind: input, shape index: {}]   ;;  %s41_s1 = inlined_call_operand.vmem [shape: f32[2,256], index: 1, kind: output, shape index: {}]  }
   0x1   :  { %v2_v0 = vld [vmem:[%s40_s0] sm:$0x3]  ;;  %v16_v1 = vld [vmem:[%s40_s0 + $0x2] sm:$0x3] }
   0x2   :  { %v5_v2 = vxor.u32 2147483648, %v2_v0  ;;  %v12_v3 = vxor.u32 2147483648, %v16_v1 }
   0x4   :  { %7 = vst [vmem:[%s41_s1] sm:$0x3] %v5_v2  ;;  %17 = vst [vmem:[%s41_s1 + $0x2] sm:$0x3] %v12_v3 }

// kernel: multibox_loss.7
= control target key start
LH: loop header
LB: loop body
LE: loop exit
PB: predicated region body
PF: predicated region fallthrough
CT: control target
= control target key end

     0   :  { %s720_s28 = smov 0   ;;  %s722_s29 = smov 0   ;;  %s820_s0 = inlined_call_operand.vmem [shape: f32[64,128], index: 0, kind: input, shape index: {}]   ;;  %s821_s1 = inlined_call_operand.vmem [shape: f32[64,128], index: 1, kind: input, shape index: {}]   ;;  %s822_s2 = inlined_call_operand.vmem [shape: f32[512], index: 2, kind: input, shape index: {}]   ;;  %s823_s3 = inlined_call_operand.<no memory space> [shape: f32[], index: 3, kind: input, shape index: {}]   ;;  %s824_s4 = inlined_call_operand.vmem [shape: pred[512], index: 4, kind: input, shape index: {}]   ;;  %s825_s5 = inlined_call_operand.<no memory space> [shape: pred[], index: 5, kind: input, shape index: {}]   ;;  %s826_s6 = inlined_call_operand.vmem [shape: f32[16,128], index: 6, kind: output, shape index: {0}]   ;;  %s827_s7 = inlined_call_operand.vmem [shape: f32[16,128], index: 7, kind: output, shape index: {1}]  }
   0x1   :  { %v13_v0 = vstv %s823_s3  ;;  %v14_v1 = vstv %s825_s5  ;;  %s724_s30 = smov 0  }
   0x2   :  { %v718_v2 = vand.u32 255, %v14_v1 }
   0x3 LB: > { %s35_s5 = sadd.s32 1, %s666_s29  ;;  %p607_p0 = scmp.ge.s32.totalorder %s670_s30, 1  ;;  %s670_s30 = sphi %s724_s30, %s23_s30   ;;  %s666_s29 = sphi %s722_s29, %s838_s29   ;;  %s662_s28 = sphi %s720_s28, %s837_s28  }
   0x4   : > { %p37_p1 = scmp.ge.s32.totalorder %s35_s5, 2  ;;  %p270_p2 = scmp.lt.s32.totalorder %s670_s30, 3 }
   0x6   : > { %s840_s5 = smov (%p37_p1, %s35_s5), 0  ;;  %p271_p3 = pnand %p607_p0, %p270_p2 }
   0x7   : > { %s608_s8 = sshll.u32 (!%p271_p3), %s662_s28, 2  ;;  %p346_p5 = scmp.lt.s32.totalorder (!%p271_p3), %s662_s28, 0  ;;  %v387_v9 = vlaneseq (!%p271_p3) }
   0x8   : > { %274 = sbr.rel (%p271_p3) target bundleno = 37 (0x25), region = 36  ;;  %p327_p4 = scmp.lt.s32.totalorder (!%p271_p3), %s608_s8, 7 }
   0x9   : > { %s376_s17 = ssub.s32 (!%p271_p3), 0, %s662_s28  ;;  %s615_s18 = sshll.u32 (!%p271_p3), %s662_s28, 10 }
   0xa   : > { %p753_p6 = scmp.lt.s32.totalorder (!%p271_p3), %s376_s17, 0  ;;  %v388_v14 = vstv (!%p271_p3), %s615_s18  ;;  %v383_v19 = vstv (!%p271_p3), %s376_s17  ;;  %p368_p7 = scmp.lt.s32.totalorder (!%p271_p3), %s662_s28, 1 }
   0xb   : > { %v389_v22 = vadd.s32 (!%p271_p3), %v388_v14, %v387_v9  ;;  %vm384_vm4 = vcmp.lt.s32.totalorder (!%p271_p3), %v383_v19, 0 }
   0xd   : > { %vm390_vm5 = vcmp.lt.s32.totalorder (!%p271_p3), %v389_v22, 512 }
   0xf   : > { %s842_s8 = smov (!%p327_p4, %s608_s8), 7 }
  0x10   : > { %s609_s9 = sshll.u32 %s842_s8, 3 }
  0x11   : > { %s330_s12 = scalar_lea.vmem %s820_s0, %s609_s9  ;;  %s338_s15 = scalar_lea.vmem %s821_s1, %s609_s9 }
  0x12   : > { %s749_s16 = scalar_select %p346_p5, %s662_s28, 0  ;;  %v428_v3 = vld [vmem:[%s330_s12] sm:$0xff]  ;;  %v429_v4 = vld [vmem:[%s330_s12 + $0x8] sm:$0xff]  ;;  %v430_v5 = vld [vmem:[%s330_s12 + $0x10] sm:$0xff] }
  0x13   : > { %v431_v6 = vld [vmem:[%s330_s12 + $0x18] sm:$0xff]  ;;  %v432_v7 = vld [vmem:[%s338_s15] sm:$0xff]  ;;  %v433_v8 = vld [vmem:[%s338_s15 + $0x8] sm:$0xff]  ;;  %s378_s21 = scalar_select %p753_p6, 0, 255 }
  0x14   : > { %v434_v10 = vld [vmem:[%s338_s15 + $0x10] sm:$0xff]  ;;  %v435_v11 = vld [vmem:[%s338_s15 + $0x18] sm:$0xff]  ;;  %v436_v12 = vsub.f32 %v428_v3, %v432_v7  ;;  %v437_v13 = vsub.f32 %v429_v4, %v433_v8  ;;  %s612_s20 = sshll.u32 %s749_s16, 2  ;;  %s362_s8 = scalar_lea.vmem %s824_s4, %s749_s16 }
  0x15   : > { %v438_v15 = vsub.f32 %v430_v5, %v434_v10  ;;  %v439_v16 = vsub.f32 %v431_v6, %v435_v11  ;;  %s379_s22 = sand.u32 15, %s378_s21  ;;  %s349_s25 = scalar_lea.vmem %s822_s2, %s612_s20 }
  0x16   : > { %v440_v17 = vand.u32 2147483647, %v436_v12  ;;  %v441_v18 = vand.u32 2147483647, %v437_v13  ;;  %v448_v21 = vmul.f32 0.5, %v436_v12  ;;  %v449_v24 = vmul.f32 0.5, %v437_v13 }
  0x17   : > { %v442_v20 = vand.u32 2147483647, %v438_v15  ;;  %v443_v23 = vand.u32 2147483647, %v439_v16  ;;  %v450_v25 = vmul.f32 0.5, %v438_v15  ;;  %p399_p8 = scmp.ne.s32.totalorder %s379_s22, 0 }
  0x18   : > { %vm764_vm0 = vcmp.lt.f32.partialorder %v440_v17, 1.0  ;;  %vm768_vm1 = vcmp.lt.f32.partialorder %v441_v18, 1.0  ;;  %v451_v28 = vmul.f32 0.5, %v439_v16  ;;  %v452_v29 = vmul.f32 %v448_v21, %v436_v12  ;;  %s844_s28 = smov (!%p368_p7, %s662_s28), 1  ;;  %v381_v37 = vld [vmem:[%s349_s25] sm:%s379_s22] }
  0x19   : > { %vm776_vm2 = vcmp.lt.f32.partialorder %v442_v20, 1.0  ;;  %v453_v31 = vmul.f32 %v449_v24, %v437_v13  ;;  %v454_v32 = vmul.f32 %v450_v25, %v438_v15  ;;  %v617_v33 = vadd.f32 -0.5, %v440_v17  ;;  %s400_s9 = scalar_select %p399_p8, 1, 0 }
  0x1a   : > { %v455_v34 = vmul.f32 %v451_v28, %v439_v16  ;;  %v618_v35 = vadd.f32 -0.5, %v441_v18  ;;  %v619_v36 = vadd.f32 -0.5, %v442_v20  ;;  %vm783_vm3 = vcmp.lt.f32.partialorder %v443_v23, 1.0  ;;  %s613_s12 = sshll.u32 %s844_s28, 3 }
  0x1b   : > { %v620_v39 = vadd.f32 -0.5, %v443_v23  ;;  %v460_v40 = vsel %vm764_vm0, %v452_v29, %v617_v33  ;;  %v401_v41 = vld [vmem:[%s362_s8] ss:$0 sm:%s400_s9]  ;;  %v385_v46 = vsel %vm384_vm4, %v13_v0, %v381_v37  ;;  %s371_s17 = scalar_lea.vmem %s826_s6, %s613_s12  ;;  %s375_s28 = scalar_lea.vmem %s827_s7, %s613_s12 }
  0x1c   : > { %v461_v42 = vsel %vm768_vm1, %v453_v31, %v618_v35  ;;  %v462_v43 = vsel %vm776_vm2, %v454_v32, %v619_v36  ;;  %v402_v44 = vunpack.c.0.s8 %v401_v41  ;;  %v391_v51 = vsel %vm390_vm5, %v385_v46, %v13_v0 }
  0x1d   : > { %v465_v45 = vadd.f32 %v461_v42, %v460_v40  ;;  %v463_v47 = vsel %vm783_vm3, %v455_v34, %v620_v39 }
  0x1e   : > { %v409_v48 = vsel %vm384_vm4, %v718_v2, %v402_v44 }
  0x1f   : > { %v466_v49 = vadd.f32 %v465_v45, %v462_v43  ;;  %v415_v50 = vsel %vm390_vm5, %v409_v48, %v718_v2 }
  0x20   : > { %v418_v52 = vcvt.s32.f32 %v415_v50 }
  0x21   : > { %v467_v53 = vadd.f32 %v466_v49, %v463_v47 }
  0x22   : > { %vm471_vm6 = vcmp.gt.f32.partialorder %v418_v52, 0.0 }
  0x23   : > { %v473_v54 = vsel %vm471_vm6, %v391_v51, 0.0  ;;  %469 = vst [vmem:[%s371_s17] sm:$0xff] %v467_v53 }
  0x24   : > { %477 = vst [vmem:[%s375_s28] sm:$0xff] %v473_v54 }
  0x25 PF: > { %s23_s30 = sadd.s32 1, %s670_s30   ;;  %s837_s28 = smov %s666_s29 }
  0x26   : > { %p20_p9 = scmp.ge.s32.totalorder %s23_s30, 4   ;;  %s838_s29 = smov %s840_s5 }
  0x28   :  { %22 = sbr.rel (!%p20_p9) target bundleno = 3 (0x3), region = 91 }

</bundles_post_ra>
